<compile_context>
chip_gen: v6e
topology: v6e:2x2x1
jax: 0.10.0
libtpu: 0.0.40
codegen_flags: <defaults>
</compile_context>

<pallas_src>
import jax
import jax.numpy as jnp
from jax.experimental import pallas as pl
from jax.experimental.pallas import tpu as pltpu

_FEATURES = 8
_SAMPLES_PER_ROW = 128 // _FEATURES  # 16 samples packed per 128-lane row
_MAX_TILE_ROWS = 8192                # 131072 samples; ~20 MiB double-buffered VMEM


def _round_up(x, m):
    return ((x + m - 1) // m) * m


def _linear_sigmoid_kernel(x_ref, wmat_ref, b_ref, o_ref):
    # x_ref   : (TILE_R, 128) f32  -- 16 samples x 8 features per row (VMEM)
    # wmat_ref: (128, 16)     f32  -- block-diagonal weights, resident   (VMEM)
    # b_ref   : (1,)          f32  -- scalar bias                        (SMEM)
    # o_ref   : (TILE_R, 16)  f32  -- one result per packed sample       (VMEM)
    z = jnp.dot(x_ref[...], wmat_ref[...], preferred_element_type=jnp.float32)
    z = z + b_ref[0]
    # sigmoid(z) == 0.5 * tanh(0.5 * z) + 0.5  (one EUP op + one VPU FMA)
    o_ref[...] = (0.5 * jnp.tanh(0.5 * z) + 0.5).astype(o_ref.dtype)


def binary_classifier_forward(x, w, b, *, tile_rows=4096):
    """x: (B, 8) f32, w: (8, 1) f32, b: (1,) f32 -> (B, 1) f32 == sigmoid(x @ w + b).

    NOTE: for tiny batches a plain fused jax.nn.sigmoid(x @ w + b) is still the
    right call (fixed pallas_call launch overhead); this path targets large B.
    """
    B, F = x.shape
    assert F == _FEATURES and w.shape == (F, 1) and b.shape == (1,)
    x = x.astype(jnp.float32)
    w = w.astype(jnp.float32)
    b = b.astype(jnp.float32)

    b16 = (B // _SAMPLES_PER_ROW) * _SAMPLES_PER_ROW
    rows = b16 // _SAMPLES_PER_ROW

    pieces = []
    if rows > 0:
        # Free reshape (contiguous row-major): (b16, 8) -> (rows, 128).
        x_packed = x[:b16].reshape(rows, 128)

        # Block-diagonal weight matrix: w_mat[8*j + f, j] = w[f].
        w_vec = w.reshape(F)
        w_mat = (jnp.eye(_SAMPLES_PER_ROW, dtype=jnp.float32)[:, None, :]
                 * w_vec[None, :, None]).reshape(128, _SAMPLES_PER_ROW)

        # Tile sizing: as big as safely fits (VMEM caps for v5e/v7x), but split
        # into >= 2 tiles when possible so v7x megacore can shard the batch.
        tr = min(int(tile_rows), _MAX_TILE_ROWS)
        tr = min(tr, max(8, _round_up(-(-rows // 2), 8)))
        num_tiles = pl.cdiv(rows, tr)

        # 2x double-buffered input + 2x (lane-padded) output blocks + slack.
        vmem_bytes = max(32 * 1024 * 1024, 4 * tr * 128 * 4 + (4 << 20))

        out_packed = pl.pallas_call(
            _linear_sigmoid_kernel,
            out_shape=jax.ShapeDtypeStruct((rows, _SAMPLES_PER_ROW), jnp.float32),
            grid_spec=pltpu.PrefetchScalarGridSpec(
                num_scalar_prefetch=0,
                grid=(num_tiles,),
                in_specs=[
                    # x tile slides along packed rows (last block may be ragged).
                    pl.BlockSpec((tr, 128), lambda i: (i, 0)),
                    # tiny weight matrix, resident for every grid step.
                    pl.BlockSpec((128, _SAMPLES_PER_ROW), lambda i: (0, 0)),
                    # scalar bias in SMEM (no VMEM DMA stream).
                    pl.BlockSpec(memory_space=pltpu.MemorySpace.SMEM),
                ],
                out_specs=pl.BlockSpec((tr, _SAMPLES_PER_ROW), lambda i: (i, 0)),
            ),
            compiler_params=pltpu.CompilerParams(
                dimension_semantics=("parallel",),
                vmem_limit_bytes=vmem_bytes,
            ),
            cost_estimate=pl.CostEstimate(
                flops=2 * b16 * F + 3 * b16,
                transcendentals=b16,
                bytes_accessed=b16 * F * 4 + b16 * 4 + 128 * _SAMPLES_PER_ROW * 4 + 4,
            ),
        )(x_packed, w_mat, b)
        pieces.append(out_packed.reshape(b16, 1))

    if b16 < B:
        # TODO(synk): sub-16-sample remainder (< one packed row) handled in plain XLA.
        tail = x[b16:]
        pieces.append(jax.nn.sigmoid(tail @ w + b.reshape(1, 1)))

    return pieces[0] if len(pieces) == 1 else jnp.concatenate(pieces, axis=0)


def _reference(x, w, b):
    return jax.nn.sigmoid(x.astype(jnp.float32) @ w + b.reshape(1, 1))


if __name__ == "__main__":
    key = jax.random.PRNGKey(0)
    kx, kw, kb, kx2 = jax.random.split(key, 4)

    F = _FEATURES
    # nn.Linear default init: U(-1/sqrt(F), 1/sqrt(F)).
    bound = 1.0 / jnp.sqrt(jnp.float32(F))
    w = jax.random.uniform(kw, (F, 1), minval=-bound, maxval=bound, dtype=jnp.float32)
    b = jax.random.uniform(kb, (1,), minval=-bound, maxval=bound, dtype=jnp.float32)

    # Exact multiple of the 16-sample packing; exercises a 2-step grid.
    B = 256
    x = jax.random.normal(kx, (B, F), dtype=jnp.float32)
    out = binary_classifier_forward(x, w, b)
    jax.block_until_ready(out)
    assert out.shape == (B, 1)
    assert jnp.allclose(out, _reference(x, w, b), atol=1e-5), "mismatch vs reference (B=256)"

    # Ragged case: partial last grid block (62 = 32 + 30 rows) + 8-sample XLA tail.
    B2 = 1000
    x2 = jax.random.normal(kx2, (B2, F), dtype=jnp.float32)
    out2 = binary_classifier_forward(x2, w, b)
    jax.block_until_ready(out2)
    assert out2.shape == (B2, 1)
    assert jnp.allclose(out2, _reference(x2, w, b), atol=1e-5), "mismatch vs reference (B=1000)"

    print("KERNEL_OK")
</pallas_src>

<mosaic_0001>
module attributes {stable_mosaic.version = 11 : i64} {
  func.func @_linear_sigmoid_kernel(%arg0: i32, %arg1: memref<8x128xf32, #tpu.memory_space<vmem>>, %arg2: memref<128x16xf32, #tpu.memory_space<vmem>>, %arg3: memref<1xf32, #tpu.memory_space<smem>>, %arg4: memref<8x16xf32, #tpu.memory_space<vmem>>) attributes {dimension_semantics = [#tpu.dimension_semantics<parallel>], iteration_bounds = array<i64: 2>, scalar_prefetch = 0 : i64, scratch_operands = 0 : i64, tpu.core_type = #tpu.core_type<tc>, window_params = [{transform_indices = @transform_0, window_bounds = array<i64: 8, 128>}, {pipeline_mode = #tpu.pipeline_mode<synchronous>, transform_indices = @transform_1, window_bounds = array<i64: 128, 16>}, {transform_indices = @transform_2, window_bounds = array<i64: 1>}, {transform_indices = @transform_3, window_bounds = array<i64: 8, 16>}]} {
    %c0 = arith.constant 0 : index
    %c0_0 = arith.constant 0 : index
    %0 = vector.load %arg1[%c0, %c0_0] : memref<8x128xf32, #tpu.memory_space<vmem>>, vector<8x128xf32>
    %c0_1 = arith.constant 0 : index
    %c0_2 = arith.constant 0 : index
    %1 = vector.load %arg2[%c0_1, %c0_2] : memref<128x16xf32, #tpu.memory_space<vmem>>, vector<128x16xf32>
    %cst = arith.constant dense<0.000000e+00> : vector<8x16xf32>
    %2 = tpu.matmul %0, %1, %cst {dimension_numbers = #tpu.dot_dimension_numbers<[1], [0], [0], [1], [0, 0, 1, 1], [], []>} : vector<8x128xf32>, vector<128x16xf32>, vector<8x16xf32> -> vector<8x16xf32>
    %c0_3 = arith.constant 0 : index
    %3 = memref.load %arg3[%c0_3] : memref<1xf32, #tpu.memory_space<smem>>
    %4 = vector.broadcast %3 : f32 to vector<8x16xf32>
    %5 = arith.addf %2, %4 : vector<8x16xf32>
    %cst_4 = arith.constant 5.000000e-01 : f32
    %6 = vector.broadcast %cst_4 : f32 to vector<8x16xf32>
    %7 = arith.mulf %6, %5 : vector<8x16xf32>
    %8 = math.tanh %7 : vector<8x16xf32>
    %cst_5 = arith.constant 5.000000e-01 : f32
    %9 = vector.broadcast %cst_5 : f32 to vector<8x16xf32>
    %10 = arith.mulf %9, %8 : vector<8x16xf32>
    %cst_6 = arith.constant 5.000000e-01 : f32
    %11 = vector.broadcast %cst_6 : f32 to vector<8x16xf32>
    %12 = arith.addf %10, %11 : vector<8x16xf32>
    %c0_7 = arith.constant 0 : index
    %c0_8 = arith.constant 0 : index
    %13 = vector.load %arg4[%c0_7, %c0_8] : memref<8x16xf32, #tpu.memory_space<vmem>>, vector<8x16xf32>
    tpu.vector_store %arg4[%c0_7, %c0_8], %12 {strides = array<i32>} : memref<8x16xf32, #tpu.memory_space<vmem>>, vector<8x16xf32>,
    return
  }
  func.func @transform_0(%arg0: i32) -> (i32, i32) {
    %c0_i32 = arith.constant 0 : i32
    %c0_i32_0 = arith.constant 0 : i32
    return %arg0, %c0_i32 : i32, i32
  }
  func.func @transform_1(%arg0: i32) -> (i32, i32) {
    %c0_i32 = arith.constant 0 : i32
    %c0_i32_0 = arith.constant 0 : i32
    %c0_i32_1 = arith.constant 0 : i32
    return %c0_i32, %c0_i32_0 : i32, i32
  }
  func.func @transform_2(%arg0: i32) -> i32 {
    %c0_i32 = arith.constant 0 : i32
    %c0_i32_0 = arith.constant 0 : i32
    return %c0_i32 : i32
  }
  func.func @transform_3(%arg0: i32) -> (i32, i32) {
    %c0_i32 = arith.constant 0 : i32
    %c0_i32_0 = arith.constant 0 : i32
    return %arg0, %c0_i32 : i32, i32
  }
}

</mosaic_0001>

<bundles_post_ra>
// kernel: tpu_custom_call.1
= control target key start
LH: loop header
LB: loop body
LE: loop exit
PB: predicated region body
PF: predicated region fallthrough
CT: control target
= control target key end

     0   :  { %s663_s0 = inlined_call_operand.vmem [shape: f32[16,128], index: 0, kind: input, shape index: {}]   ;;  %s664_s1 = inlined_call_operand.vmem [shape: f32[128,16], index: 1, kind: input, shape index: {}]   ;;  %s665_s2 = inlined_call_operand.<no memory space> [shape: f32[1], index: 2, kind: input, shape index: {}]   ;;  %s666_s3 = inlined_call_operand.hbm [shape: f32[16,16], index: 3, kind: output, shape index: {}]  }
   0x1   :  { %8 = sst [smem:[#allocation2]] %s665_s2 }
   0x2   :  { %9 = vsyncpa [#allocation4], 0 }
   0x3   :  { %11 = vsyncpa [#allocation4 + $0x1], 0  ;;  %s528_s14 = smov 0   ;;  %s530_s15 = smov 0  }
   0x4   :  { %s532_s16 = smov 0   ;;  %s534_s17 = smov 0  }
   0x5 LB: > { %s549_s2 = sadd.s32 4294967295, %s500_s17   ;;  %s335_s18 = sadd.s32 4294967294, %s500_s17   ;;  %s500_s17 = sphi %s534_s17, %s672_s17   ;;  %s496_s16 = sphi %s532_s16, %s671_s16   ;;  %s492_s15 = sphi %s530_s15, %s670_s15   ;;  %s488_s14 = sphi %s528_s14, %s669_s14  }
   0x6   : > { %s553_s19 = sadd.s32 1, %s500_s17   ;;  %s92_s20 = sadd.s32 1, %s496_s16 }
   0x7   : > { %s89_s21 = ssub.s32 %s500_s17, %s553_s19  ;;  %p102_p0 = scmp.ne.s32.totalorder %s496_s16, %s492_s15 }
   0x8   : > { %p90_p1 = scmp.eq.s32.totalorder %s89_s21, 0  ;;  %p103_p2 = scmp.eq.s32.totalorder %s549_s2, 1 }
   0x9   : > { %p108_p3 = scmp.ne.s32.totalorder %s492_s15, %s488_s14  ;;  %p109_p4 = scmp.eq.s32.totalorder %s335_s18, 1 }
   0xa   : > { %s564_s22 = scalar_select %p90_p1, %s496_s16, %s92_s20  }
   0xb   : > { %p566_p5 = por %p103_p2, %p102_p0  ;;  %p570_p6 = por %p109_p4, %p108_p3 }
   0xc   : > { %p338_p7 = scmp.ge.s32.totalorder %s500_s17, 1  ;;  %p140_p8 = scmp.lt.s32.totalorder %s500_s17, 3 }
   0xe   : > { %p141_p9 = pnand %p338_p7, %p140_p8 }
   0xf   : > { %p163_p10 = scmp.lt.s32.totalorder (!%p141_p9), %s549_s2, 1  ;;  %s184_s21 = sld [smem:[#allocation2]] (!%p141_p9) }
  0x10   : > { %144 = sbr.rel (%p141_p9) target bundleno = 282 (0x11a), region = 32  ;;  %s160_s25 = sand.u32 (!%p141_p9), 1, %s492_s15  }
  0x11   : > { %s339_s26 = sshll.u32 (!%p141_p9), %s160_s25, 3  ;;  %s342_s27 = sshll.u32 (!%p141_p9), %s549_s2, 7 }
  0x12   : > { %s274_s5 = scalar_lea.hbm (!%p141_p9), %s666_s3, %s342_s27  ;;  %s504_s8 = smov (!%p141_p9), [#allocation3]  }
  0x13   : > { %s444_s9 = sshll.u32 (!%p141_p9), %s504_s8, 4  ;;  %s445_s9 = int_to_ptr.vmem [resolvable:$false] %s444_s9 }
  0x15   : > { %v183_v0 = vld [vmem:[%s664_s1 + $0x78] sm:$0xff]  ;;  %v502_v1 = vmov 0.0   ;;  %v182_v2 = vld [vmem:[%s664_s1 + $0x70] sm:$0xff]  ;;  %vm503_vm0 = vmmov 0   ;;  %v181_v3 = vld [vmem:[%s664_s1 + $0x68] sm:$0xff]  ;;  %s164_s28 = scalar_select %p163_p10, %s549_s2, 1  ;;  %v185_v18 = vstv %s184_s21 }
  0x16   : > { %362 = vmatprep.subr.mxu0 %v502_v1  ;;  %394 = vmatprep.mubr.msk.f32.mxu0 %vm503_vm0, %v502_v1  ;;  %v180_v4 = vld [vmem:[%s664_s1 + $0x60] sm:$0xff]  ;;  %v179_v5 = vld [vmem:[%s664_s1 + $0x58] sm:$0xff]  ;;  %v178_v6 = vld [vmem:[%s664_s1 + $0x50] sm:$0xff]  ;;  %vm260_vm1 = vcmask 130048   ;;  %s446_s2 = scalar_lea.vmem %s445_s9, 256 }
  0x17   : > { %363 = vmatpush3.msra.mxu0 %v183_v0  ;;  %v177_v7 = vld [vmem:[%s664_s1 + $0x48] sm:$0xff]  ;;  %v176_v8 = vld [vmem:[%s664_s1 + $0x40] sm:$0xff]  ;;  %v175_v9 = vld [vmem:[%s664_s1 + $0x38] sm:$0xff]  ;;  %s340_s6 = sshll.u32 %s164_s28, 3  ;;  %s162_s28 = scalar_lea.vmem [#allocation3], %s339_s26 }
  0x18   : > { %364 = vmatprep.subr.mxu0 %v502_v1  ;;  %v174_v10 = vld [vmem:[%s664_s1 + $0x30] sm:$0xff]  ;;  %v173_v11 = vld [vmem:[%s664_s1 + $0x28] sm:$0xff]  ;;  %v172_v12 = vld [vmem:[%s664_s1 + $0x20] sm:$0xff]  ;;  %s166_s13 = scalar_lea.vmem %s663_s0, %s340_s6  ;;  %s276_s29 = sshll.u32 %s162_s28, 4  ;;  %s277_s29 = int_to_ptr.vmem [resolvable:$true] %s276_s29 }
  0x19   : > { %365 = vmatpush3.msra.mxu0 %v182_v2  ;;  %v171_v13 = vld [vmem:[%s664_s1 + $0x18] sm:$0xff]  ;;  %v170_v14 = vld [vmem:[%s664_s1 + $0x10] sm:$0xff]  ;;  %v169_v15 = vld [vmem:[%s664_s1 + $0x8] sm:$0xff]  ;;  %s263_s6 = scalar_lea.sflag [#allocation4], %s160_s25  ;;  %s440_s7 = scalar_lea.vmem %s277_s29, 128 }
  0x1a   : > { %366 = vmatprep.subr.mxu0 %v502_v1  ;;  %v168_v16 = vld [vmem:[%s664_s1] sm:$0xff]  ;;  %p441_p11 = scmp.ne.s32.totalorder %s277_s29, %s440_s7  ;;  %p447_p0 = scmp.lt.s32.totalorder %s277_s29, %s445_s9 }
  0x1b   : > { %367 = vmatpush3.msra.mxu0 %v181_v3  ;;  %v167_v17 = vld [vmem:[%s166_s13] sm:$0xff]  ;;  %p448_p1 = scmp.lt.s32.totalorder %s446_s2, %s440_s7 }
  0x1c   : > { %368 = vmatprep.subr.mxu0 %v502_v1  ;;  %p442_p12 = pnand %p441_p11, %p566_p5 }
  0x1d   : > { %369 = vmatpush3.msra.mxu0 %v180_v4  ;;  %p449_p2 = por %p448_p1, %p447_p0 }
  0x1e   : > { %370 = vmatprep.subr.mxu0 %v502_v1  ;;  %p443_p13 = pneg %p442_p12 }
  0x1f   : > { %371 = vmatpush3.msra.mxu0 %v179_v5 }
  0x20   : > { %372 = vmatprep.subr.mxu0 %v502_v1  ;;  %p450_p3 = pnand %p449_p2, %p443_p13 }
  0x21   : > { %373 = vmatpush3.msra.mxu0 %v178_v6 }
  0x22   : > { %374 = vmatprep.subr.mxu0 %v502_v1 }
  0x23   : > { %375 = vmatpush3.msra.mxu0 %v177_v7 }
  0x24   : > { %376 = vmatprep.subr.mxu0 %v502_v1 }
  0x25   : > { %377 = vmatpush3.msra.mxu0 %v176_v8 }
  0x26   : > { %378 = vmatprep.subr.mxu0 %v502_v1 }
  0x27   : > { %379 = vmatpush3.msra.mxu0 %v175_v9 }
  0x28   : > { %380 = vmatprep.subr.mxu0 %v502_v1 }
  0x29   : > { %381 = vmatpush3.msra.mxu0 %v174_v10 }
  0x2a   : > { %382 = vmatprep.subr.mxu0 %v502_v1 }
  0x2b   : > { %383 = vmatpush3.msra.mxu0 %v173_v11 }
  0x2c   : > { %384 = vmatprep.subr.mxu0 %v502_v1 }
  0x2d   : > { %385 = vmatpush3.msra.mxu0 %v172_v12 }
  0x2e   : > { %386 = vmatprep.subr.mxu0 %v502_v1 }
  0x2f   : > { %387 = vmatpush3.msra.mxu0 %v171_v13 }
  0x30   : > { %388 = vmatprep.subr.mxu0 %v502_v1 }
  0x31   : > { %389 = vmatpush3.msra.mxu0 %v170_v14 }
  0x32   : > { %390 = vmatprep.subr.mxu0 %v502_v1 }
  0x33   : > { %391 = vmatpush3.msra.mxu0 %v169_v15 }
  0x34   : > { %392 = vmatprep.subr.mxu0 %v502_v1 }
  0x35   : > { %393 = vmatpush3.msra.mxu0 %v168_v16 }
  0x36   : > { %395 = vmatmul.mubr.f32.vlgmr.msra.gmra.mxu0 %v167_v17 }
  0xf6   : > { %v252_v19 = vpop.f32.mrf.mxu0 }
  0xf7   : > { %v253_v20 = vadd.f32 %v252_v19, %v185_v18 }
  0xf8   : > { %v396_v21 = vpop.f32.mrf.mxu0 }
  0xf9   : > { %v256_v22 = vmul.f32 0.5, %v253_v20 }
  0xfb   : > { %438 = vtanh.f32 %v256_v22 }
 0x108   : > { %v439_v23 = vpop.eup %438 }
 0x109   : > { %v258_v24 = vmul.f32 0.5, %v439_v23 }
 0x10b   : > { %v259_v25 = vadd.f32 0.5, %v258_v24 }
 0x10d   : > { %261 = vst.msk [vmem:[%s162_s28] sm:$0xff] %vm260_vm1, %v259_v25 }
 0x10e   : > { %453 = shalt.err (!%p450_p3)
}
 0x10f   : > { %s454_s10 = scalar_lea.hbm %s274_s5, 128  ;;  %s458_s13 = scalar_lea.hbm %s666_s3, 256 }
 0x110   : > { %p455_p4 = scmp.ne.s32.totalorder %s274_s5, %s454_s10  ;;  %p459_p9 = scmp.lt.s32.totalorder %s274_s5, %s666_s3 }
 0x111   : > { %p460_p10 = scmp.lt.s32.totalorder %s458_s13, %s454_s10 }
 0x112   : > { %p456_p7 = pnand %p455_p4, %p566_p5 }
 0x113   : > { %p461_p11 = por %p460_p10, %p459_p9 }
 0x114   : > { %p457_p8 = pneg %p456_p7 }
 0x116   : > { %p462_p12 = pnand %p461_p11, %p457_p8 }
 0x118   : > { %465 = shalt.err (!%p462_p12)
}
 0x119   : > { %397 = dma.vmem_to_hbm [thread:$0]  (%p566_p5), %s277_s29, 128, %s274_s5, %s263_s6  }
 0x11a PF: > { %p403_p13 = scmp.ge.s32.totalorder %s500_s17, 2  ;;  %s288_s21 = sand.u32 1, %s488_s14  }
 0x11b   : > { %s289_s25 = scalar_lea.sflag [#allocation4], %s288_s21 }
 0x11c   : > { %p400_p0 = pnand %p403_p13, %p570_p6 }
 0x11e   : > { %p401_p1 = pneg %p400_p0 }
 0x120   : > { %483 = dma.done.wait (%p401_p1), %s289_s25, 128  }
 0x121   : > { %485 = vsyncadd (%p401_p1), %s289_s25, 4294967168  ;;  %p14_p2 = scmp.ge.s32.totalorder %s553_s19, 4   ;;  %s669_s14 = smov %s492_s15 }
 0x122   : > { %s670_s15 = smov %s496_s16  ;;  %s671_s16 = smov %s564_s22 }
 0x123   : > { %s672_s17 = smov %s553_s19  ;;  %16 = sbr.rel (!%p14_p2) target bundleno = 5 (0x5), region = 67 }
 0x128   :  { %294 = vsyncpa [#allocation4], 1 }
 0x129   :  { %296 = vsyncpa [#allocation4 + $0x1], 1 }

</bundles_post_ra>
